<compile_context>
chip_gen: v6e
topology: v6e:2x2x1
jax: 0.10.0
libtpu: 0.0.40
codegen_flags: <defaults>
</compile_context>

<pallas_src>
import jax
import jax.numpy as jnp
from jax.experimental import pallas as pl
from jax.experimental.pallas import tpu as pltpu


def _round_up(x, m):
    return (x + m - 1) // m * m


def _fc_kernel(x_ref, w_ref, b_ref, o_ref):
    """Single-step FC:  o = x @ w.T + b  (f32 accumulation on the MXU).

    x_ref: (bs, K)      bf16
    w_ref: (N_pad, K)   bf16  -- PyTorch (out_features, in_features) layout
    b_ref: (1, N_pad)   f32
    o_ref: (bs, N_pad)  f32   -- lane-dense (N_pad % 128 == 0)
    """
    acc = jax.lax.dot_general(
        x_ref[...],
        w_ref[...],
        dimension_numbers=(((1,), (1,)), ((), ())),  # contract K with K
        preferred_element_type=jnp.float32,
    )
    o_ref[...] = (acc + b_ref[...]).astype(o_ref.dtype)


def rn101_newtop_fc(x_flat, weight, bias):
    """x_flat: (bs, K) f32, weight: (num_classes, K) f32 (PyTorch layout),
    bias: (num_classes,) f32.  Returns (bs, num_classes) f32."""
    bs, K = x_flat.shape
    num_classes = weight.shape[0]
    assert weight.shape == (num_classes, K)

    # Lane-dense output: pad the class dim up to a multiple of 128 and slice
    # after the kernel.  (In a real inference graph the padded/bf16 weight
    # would be a one-time constant fold, not a per-call op.)
    n_pad = _round_up(num_classes, 128)

    x_bf16 = x_flat.astype(jnp.bfloat16)
    w_pad = jnp.pad(weight, ((0, n_pad - num_classes), (0, 0))).astype(jnp.bfloat16)
    b_pad = (
        jnp.pad(bias, (0, n_pad - num_classes))
        .reshape(1, n_pad)
        .astype(jnp.float32)
    )

    bytes_accessed = (
        x_bf16.size * 2      # activations (bf16)
        + w_pad.size * 2     # weight (bf16) — dominant term
        + b_pad.size * 4     # bias (f32)
        + bs * n_pad * 4     # output (f32)
    )

    out_pad = pl.pallas_call(
        _fc_kernel,
        out_shape=jax.ShapeDtypeStruct((bs, n_pad), jnp.float32),
        in_specs=[
            pl.BlockSpec(memory_space=pltpu.MemorySpace.VMEM),  # x (whole array)
            pl.BlockSpec(memory_space=pltpu.MemorySpace.VMEM),  # weight
            pl.BlockSpec(memory_space=pltpu.MemorySpace.VMEM),  # bias
        ],
        out_specs=pl.BlockSpec(memory_space=pltpu.MemorySpace.VMEM),
        cost_estimate=pl.CostEstimate(
            flops=2 * bs * K * n_pad,
            transcendentals=0,
            bytes_accessed=bytes_accessed,
        ),
    )(x_bf16, w_pad, b_pad)

    return out_pad[:, :num_classes]


def rn101_newtop_forward(x_nchw, weight, bias):
    """Full RN101_newtop forward (base == identity feature extractor)."""
    bs = x_nchw.shape[0]
    x_flat = x_nchw.reshape(bs, -1)  # torch .reshape(bs, -1), row-major NCHW
    return rn101_newtop_fc(x_flat, weight, bias)


if __name__ == "__main__":
    key = jax.random.PRNGKey(0)
    k_in, k_w, k_b = jax.random.split(key, 3)

    # Small shapes: feature map (bs=2, c=8, h=16, w=16) -> 8*16*16 = 2048,
    # matching the nn.Linear(2048, num_classes) contract.
    bs, C, H, W = 2, 8, 16, 16
    num_classes = 16

    x = jax.random.normal(k_in, (bs, C, H, W), dtype=jnp.float32)
    # Deterministic Linear params (PyTorch layout: weight (out, in), bias (out,))
    fc_weight = jax.random.normal(k_w, (num_classes, C * H * W), jnp.float32) * 0.02
    fc_bias = jax.random.normal(k_b, (num_classes,), jnp.float32) * 0.02

    out = rn101_newtop_forward(x, fc_weight, fc_bias)
    out = jax.block_until_ready(out)

    # Reference check in plain JAX (same math as torch: x @ W.T + b).
    # Tolerance loosened because the kernel runs the matmul in bf16
    # (f32 accumulation).
    ref = x.reshape(bs, -1) @ fc_weight.T + fc_bias
    assert out.shape == (bs, num_classes)
    assert jnp.allclose(out, ref, atol=5e-2, rtol=5e-2), "mismatch vs reference"

    print("KERNEL_OK")
</pallas_src>

<mosaic_0001>
module attributes {stable_mosaic.version = 11 : i64} {
  func.func @_fc_kernel(%arg0: memref<2x2048xbf16, #tpu.memory_space<vmem>>, %arg1: memref<128x2048xbf16, #tpu.memory_space<vmem>>, %arg2: memref<1x128xf32, #tpu.memory_space<vmem>>, %arg3: memref<2x128xf32, #tpu.memory_space<vmem>>) attributes {dimension_semantics = [], scalar_prefetch = 0 : i64, scratch_operands = 0 : i64, tpu.core_type = #tpu.core_type<tc>} {
    %c0 = arith.constant 0 : index
    %c0_0 = arith.constant 0 : index
    %0 = vector.load %arg0[%c0, %c0_0] : memref<2x2048xbf16, #tpu.memory_space<vmem>>, vector<2x2048xbf16>
    %c0_1 = arith.constant 0 : index
    %c0_2 = arith.constant 0 : index
    %1 = vector.load %arg1[%c0_1, %c0_2] : memref<128x2048xbf16, #tpu.memory_space<vmem>>, vector<128x2048xbf16>
    %cst = arith.constant dense<0.000000e+00> : vector<2x128xf32>
    %2 = tpu.matmul %0, %1, %cst {dimension_numbers = #tpu.dot_dimension_numbers<[1], [1], [0], [0], [0, 0, 1, 0], [], []>} : vector<2x2048xbf16>, vector<128x2048xbf16>, vector<2x128xf32> -> vector<2x128xf32>
    %c0_3 = arith.constant 0 : index
    %c0_4 = arith.constant 0 : index
    %3 = vector.load %arg2[%c0_3, %c0_4] : memref<1x128xf32, #tpu.memory_space<vmem>>, vector<1x128xf32>
    %4 = vector.broadcast %3 : vector<1x128xf32> to vector<2x128xf32>
    %5 = arith.addf %2, %4 : vector<2x128xf32>
    %c0_5 = arith.constant 0 : index
    %c0_6 = arith.constant 0 : index
    %6 = vector.load %arg3[%c0_5, %c0_6] : memref<2x128xf32, #tpu.memory_space<vmem>>, vector<2x128xf32>
    tpu.vector_store %arg3[%c0_5, %c0_6], %5 {strides = array<i32>} : memref<2x128xf32, #tpu.memory_space<vmem>>, vector<2x128xf32>,
    return
  }
}

</mosaic_0001>

<bundles_post_ra>
// kernel: tpu_custom_call.1
= control target key start
LH: loop header
LB: loop body
LE: loop exit
PB: predicated region body
PF: predicated region fallthrough
CT: control target
= control target key end

     0   :  { %8 = vsyncpa [#allocation3], 0  ;;  %s1557_s0 = inlined_call_operand.hbm [shape: bf16[2,2048], index: 0, kind: input, shape index: {}]   ;;  %s1558_s1 = inlined_call_operand.hbm [shape: bf16[128,2048], index: 1, kind: input, shape index: {}]   ;;  %s1559_s2 = inlined_call_operand.vmem [shape: f32[1,128], index: 2, kind: input, shape index: {}]   ;;  %s1560_s3 = inlined_call_operand.hbm [shape: f32[2,128], index: 3, kind: output, shape index: {}]  }
   0x1   :  { %9 = vsyncpa [#allocation6], 0 }
   0x2   :  { %10 = vsyncpa [#allocation4], 0  ;;  %s1475_s12 = smov [#allocation2]   ;;  %s1476_s14 = smov [#allocation5]  }
   0x3   :  { %s17_s13 = sshll.u32 %s1475_s12, 4  ;;  %s26_s15 = sshll.u32 %s1476_s14, 4  ;;  %s18_s13 = int_to_ptr.vmem [resolvable:$true] %s17_s13  ;;  %s27_s15 = int_to_ptr.vmem [resolvable:$true] %s26_s15 }
   0x4   :  { %s1417_s16 = scalar_lea.vmem %s18_s13, 256  ;;  %p1422_p1 = scmp.lt.s32.totalorder %s18_s13, %s18_s13 }
   0x5   :  { %p1418_p0 = scmp.ne.s32.totalorder %s18_s13, %s1417_s16  ;;  %p1423_p2 = scmp.lt.s32.totalorder %s1417_s16, %s1417_s16 }
   0x7   :  { %p1424_p3 = por %p1423_p2, %p1422_p1 }
   0x9   :  { %p1425_p4 = pnand %p1424_p3, %p1418_p0 }
   0xb   :  { %1428 = shalt.err (!%p1425_p4)
}
   0xc   :  { %20 = dma.hbm_to_vmem [thread:$0]  %s1557_s0, 256, %s18_s13, [#allocation3]  }
   0xd   :  { %s1437_s19 = scalar_lea.vmem %s27_s15, 16384  ;;  %p1442_p6 = scmp.lt.s32.totalorder %s27_s15, %s27_s15 }
   0xe   :  { %p1438_p5 = scmp.ne.s32.totalorder %s27_s15, %s1437_s19  ;;  %p1443_p7 = scmp.lt.s32.totalorder %s1437_s19, %s1437_s19 }
  0x10   :  { %p1444_p8 = por %p1443_p7, %p1442_p6 }
  0x12   :  { %p1445_p9 = pnand %p1444_p8, %p1438_p5 }
  0x14   :  { %1448 = shalt.err (!%p1445_p9)
}
  0x15   :  { %s1477_s20 = smov 1024   ;;  %s1478_s21 = smov 64  }
  0x16   :  { %32 = dma.hbm_to_vmem [thread:$0]  %s1558_s1, 16384, %s27_s15, [#allocation6], %s1477_s20, %s1477_s20, %s1478_s21  }
  0x17   :  { %1469 = dma.done.wait [#allocation3], 256  }
  0x18   :  { %1470 = vsyncadd [#allocation3], 4294967040 }
  0x19   :  { %1471 = dma.done.wait [#allocation6], 16384  }
  0x1a   :  { %1472 = vsyncadd [#allocation6], 4294950912  ;;  %v1479_v0 = vmov 1966171168   ;;  %v185_v2 = vlaneseq  ;;  %v156_v3 = vld [vmem:[#allocation5 + $0x380] sm:$0xff]  ;;  %v157_v5 = vld [vmem:[#allocation5 + $0x388] sm:$0xff] }
  0x1b   :  { %v183_v1 = vunpack.c.l.s4 %v1479_v0  ;;  %v164_v4 = vld [vmem:[#allocation5 + $0x3c0] sm:$0xff]  ;;  %v165_v7 = vld [vmem:[#allocation5 + $0x3c8] sm:$0xff]  ;;  %v1509_v28 = vld [vmem:[#allocation2] sm:$0xff] }
  0x1c   :  { %v1386_v6 = vcombine.high %v156_v3, %v164_v4  ;;  %v1385_v8 = vcombine.low %v156_v3, %v164_v4  ;;  %v140_v9 = vld [vmem:[#allocation5 + $0x300] sm:$0xff]  ;;  %v1388_v11 = vcombine.high %v157_v5, %v165_v7  ;;  %v1387_v12 = vcombine.low %v157_v5, %v165_v7  ;;  %v141_v14 = vld [vmem:[#allocation5 + $0x308] sm:$0xff] }
  0x1d   :  { %v148_v10 = vld [vmem:[#allocation5 + $0x340] sm:$0xff]  ;;  %v149_v15 = vld [vmem:[#allocation5 + $0x348] sm:$0xff]  ;;  %v184_v17 = vunpack.c.0.s8 %v183_v1  ;;  %v186_v18 = vshrl.u32 %v185_v2, 7 }
  0x1e   :  { %v1370_v13 = vcombine.high %v140_v9, %v148_v10  ;;  %935 = vmatprep.subr.bf16.mxu0 %v1386_v6  ;;  %v1372_v16 = vcombine.high %v141_v14, %v149_v15  ;;  %975 = vmatprep.subr.bf16.mxu1 %v1388_v11  ;;  %v124_v19 = vld [vmem:[#allocation5 + $0x280] sm:$0xff]  ;;  %v125_v21 = vld [vmem:[#allocation5 + $0x288] sm:$0xff]  ;;  %v1369_v24 = vcombine.low %v140_v9, %v148_v10  ;;  %v158_v10 = vld [vmem:[#allocation5 + $0x390] sm:$0xff] }
  0x1f   :  { %936 = vmatpush1.bf16.xpose.msra.mxu0 %v1385_v8  ;;  %976 = vmatpush1.bf16.xpose.msra.mxu1 %v1387_v12  ;;  %v132_v20 = vld [vmem:[#allocation5 + $0x2c0] sm:$0xff]  ;;  %v133_v22 = vld [vmem:[#allocation5 + $0x2c8] sm:$0xff]  ;;  %v1507_v23 = vsub.s32 %v184_v17, %v186_v18  ;;  %v1371_v25 = vcombine.low %v141_v14, %v149_v15  ;;  %v181_v9 = vcombine.high %v1509_v28, %v1509_v28  ;;  %v166_v11 = vld [vmem:[#allocation5 + $0x3d0] sm:$0xff] }
  0x20   :  { %937 = vmatprep.subr.bf16.mxu0 %v1370_v13  ;;  %977 = vmatprep.subr.bf16.mxu1 %v1372_v16  ;;  %v1354_v26 = vcombine.high %v124_v19, %v132_v20  ;;  %v1356_v27 = vcombine.high %v125_v21, %v133_v22  ;;  %v108_v31 = vld [vmem:[#allocation5 + $0x200] sm:$0xff]  ;;  %v109_v33 = vld [vmem:[#allocation5 + $0x208] sm:$0xff]  ;;  %v1353_v36 = vcombine.low %v124_v19, %v132_v20  ;;  %v159_v12 = vld [vmem:[#allocation5 + $0x398] sm:$0xff] }
  0x21   :  { %v1513_v29 = vrot.slane %v1509_v28, %v1507_v23  ;;  %v116_v32 = vld [vmem:[#allocation5 + $0x240] sm:$0xff]  ;;  %v117_v34 = vld [vmem:[#allocation5 + $0x248] sm:$0xff]  ;;  %v1355_v37 = vcombine.low %v125_v21, %v133_v22  ;;  %v167_v13 = vld [vmem:[#allocation5 + $0x3d8] sm:$0xff]  ;;  %v1521_v14 = vrot.slane %v181_v9, %v1507_v23  ;;  %v1390_v17 = vcombine.high %v158_v10, %v166_v11 }
  0x22   :  { %v1338_v38 = vcombine.high %v108_v31, %v116_v32  ;;  %v1340_v40 = vcombine.high %v109_v33, %v117_v34  ;;  %v92_v41 = vld [vmem:[#allocation5 + $0x180] sm:$0xff]  ;;  %v93_v43 = vld [vmem:[#allocation5 + $0x188] sm:$0xff]  ;;  %v1337_v45 = vcombine.low %v108_v31, %v116_v32  ;;  %v1339_v46 = vcombine.low %v109_v33, %v117_v34  ;;  %v142_v21 = vld [vmem:[#allocation5 + $0x310] sm:$0xff] }
  0x23   :  { %v196_v30 = vcombine.high %v1513_v29, %v1513_v29  ;;  %v100_v42 = vld [vmem:[#allocation5 + $0x1c0] sm:$0xff]  ;;  %v101_v44 = vld [vmem:[#allocation5 + $0x1c8] sm:$0xff]  ;;  %v1392_v18 = vcombine.high %v159_v12, %v167_v13  ;;  %v197_v19 = vcombine.high %v1521_v14, %v1521_v14  ;;  %v204_v20 = vrot.slane %v1513_v29, %v1507_v23  ;;  %v150_v22 = vld [vmem:[#allocation5 + $0x350] sm:$0xff] }
  0x24   :  { %v1322_v47 = vcombine.high %v92_v41, %v100_v42  ;;  %v1324_v48 = vcombine.high %v93_v43, %v101_v44  ;;  %v76_v49 = vld [vmem:[#allocation5 + $0x100] sm:$0xff]  ;;  %v77_v51 = vld [vmem:[#allocation5 + $0x108] sm:$0xff]  ;;  %v1321_v53 = vcombine.low %v92_v41, %v100_v42  ;;  %v1323_v54 = vcombine.low %v93_v43, %v101_v44  ;;  %v126_v29 = vld [vmem:[#allocation5 + $0x290] sm:$0xff] }
  0x25   :  { %v218_v35 = vrot.slane %v196_v30, %v1507_v23  ;;  %v84_v50 = vld [vmem:[#allocation5 + $0x140] sm:$0xff]  ;;  %v85_v52 = vld [vmem:[#allocation5 + $0x148] sm:$0xff]  ;;  %v1389_v28 = vcombine.low %v158_v10, %v166_v11  ;;  %v1391_v30 = vcombine.low %v159_v12, %v167_v13  ;;  %v1374_v31 = vcombine.high %v142_v21, %v150_v22  ;;  %v134_v34 = vld [vmem:[#allocation5 + $0x2d0] sm:$0xff] }
  0x26   :  { %v1306_v55 = vcombine.high %v76_v49, %v84_v50  ;;  %v1308_v56 = vcombine.high %v77_v51, %v85_v52  ;;  %v60_v57 = vld [vmem:[#allocation5 + $0x80] sm:$0xff]  ;;  %v61_v59 = vld [vmem:[#allocation5 + $0x88] sm:$0xff]  ;;  %v1305_v61 = vcombine.low %v76_v49, %v84_v50  ;;  %v1307_v62 = vcombine.low %v77_v51, %v85_v52  ;;  %v110_v41 = vld [vmem:[#allocation5 + $0x210] sm:$0xff] }
  0x27   :  { %938 = vmatpush1.bf16.xpose.msra.mxu0 %v1369_v24  ;;  %978 = vmatpush1.bf16.xpose.msra.mxu1 %v1371_v25  ;;  %v228_v39 = vcombine.high %v218_v35, %v218_v35  ;;  %v68_v58 = vld [vmem:[#allocation5 + $0xc0] sm:$0xff]  ;;  %v69_v60 = vld [vmem:[#allocation5 + $0xc8] sm:$0xff]  ;;  %v143_v24 = vld [vmem:[#allocation5 + $0x318] sm:$0xff] }
  0x28   :  { %939 = vmatprep.subr.bf16.mxu0 %v1354_v26  ;;  %979 = vmatprep.subr.bf16.mxu1 %v1356_v27  ;;  %v1290_v63 = vcombine.high %v60_v57, %v68_v58  ;;  %v1292_v0 = vcombine.high %v61_v59, %v69_v60  ;;  %v44_v1 = vld [vmem:[#allocation5] sm:$0xff]  ;;  %v45_v3 = vld [vmem:[#allocation5 + $0x8] sm:$0xff]  ;;  %v1289_v5 = vcombine.low %v60_v57, %v68_v58  ;;  %v151_v25 = vld [vmem:[#allocation5 + $0x358] sm:$0xff] }
  0x29   :  { %967 = vmatprep.mubr.bf16.mxu0 %v218_v35  ;;  %1007 = vmatprep.mubr.bf16.mxu1 %v228_v39  ;;  %v52_v2 = vld [vmem:[#allocation5 + $0x40] sm:$0xff]  ;;  %v53_v4 = vld [vmem:[#allocation5 + $0x48] sm:$0xff]  ;;  %v1291_v6 = vcombine.low %v61_v59, %v69_v60  ;;  %v225_v26 = vrot.slane %v197_v19, %v1507_v23  ;;  %v226_v27 = vcombine.high %v204_v20, %v204_v20  ;;  %v127_v35 = vld [vmem:[#allocation5 + $0x298] sm:$0xff] }
  0x2a   :  { %v1274_v7 = vcombine.high %v44_v1, %v52_v2  ;;  %v1276_v8 = vcombine.high %v45_v3, %v53_v4  ;;  %v1273_v15 = vcombine.low %v44_v1, %v52_v2  ;;  %v1275_v16 = vcombine.low %v45_v3, %v53_v4  ;;  %v118_v42 = vld [vmem:[#allocation5 + $0x250] sm:$0xff]  ;;  %v111_v43 = vld [vmem:[#allocation5 + $0x218] sm:$0xff]  ;;  %v160_v19 = vld [vmem:[#allocation5 + $0x3a0] sm:$0xff] }
  0x2b   :  { %v1376_v32 = vcombine.high %v143_v24, %v151_v25  ;;  %v229_v33 = vcombine.high %v225_v26, %v225_v26  ;;  %v1358_v39 = vcombine.high %v126_v29, %v134_v34  ;;  %v119_v44 = vld [vmem:[#allocation5 + $0x258] sm:$0xff]  ;;  %v94_v49 = vld [vmem:[#allocation5 + $0x190] sm:$0xff] }
  0x2c   :  { %v102_v50 = vld [vmem:[#allocation5 + $0x1d0] sm:$0xff]  ;;  %v95_v51 = vld [vmem:[#allocation5 + $0x198] sm:$0xff] }
  0x2d   :  { %v103_v52 = vld [vmem:[#allocation5 + $0x1d8] sm:$0xff]  ;;  %v78_v57 = vld [vmem:[#allocation5 + $0x110] sm:$0xff] }
  0x2e   :  { %v86_v58 = vld [vmem:[#allocation5 + $0x150] sm:$0xff]  ;;  %v79_v59 = vld [vmem:[#allocation5 + $0x118] sm:$0xff] }
  0x2f   :  { %940 = vmatpush1.bf16.xpose.msra.mxu0 %v1353_v36  ;;  %980 = vmatpush1.bf16.xpose.msra.mxu1 %v1355_v37  ;;  %v135_v36 = vld [vmem:[#allocation5 + $0x2d8] sm:$0xff]  ;;  %v1373_v37 = vcombine.low %v142_v21, %v150_v22  ;;  %v62_v1 = vld [vmem:[#allocation5 + $0x90] sm:$0xff]  ;;  %v161_v21 = vld [vmem:[#allocation5 + $0x3a8] sm:$0xff] }
  0x30   :  { %941 = vmatprep.subr.bf16.mxu0 %v1338_v38  ;;  %981 = vmatprep.subr.bf16.mxu1 %v1340_v40  ;;  %v1375_v38 = vcombine.low %v143_v24, %v151_v25  ;;  %v1360_v40 = vcombine.high %v127_v35, %v135_v36  ;;  %v87_v60 = vld [vmem:[#allocation5 + $0x158] sm:$0xff]  ;;  %v70_v2 = vld [vmem:[#allocation5 + $0xd0] sm:$0xff]  ;;  %v169_v22 = vld [vmem:[#allocation5 + $0x3e8] sm:$0xff] }
  0x31   :  { %v63_v3 = vld [vmem:[#allocation5 + $0x98] sm:$0xff]  ;;  %v46_v9 = vld [vmem:[#allocation5 + $0x10] sm:$0xff]  ;;  %v1293_v13 = vcombine.low %v62_v1, %v70_v2 }
  0x32   :  { %v71_v4 = vld [vmem:[#allocation5 + $0xd8] sm:$0xff]  ;;  %v54_v10 = vld [vmem:[#allocation5 + $0x50] sm:$0xff] }
  0x33   :  { %v47_v11 = vld [vmem:[#allocation5 + $0x18] sm:$0xff]  ;;  %v1277_v25 = vcombine.low %v46_v9, %v54_v10 }
  0x34   :  { %v55_v12 = vld [vmem:[#allocation5 + $0x58] sm:$0xff] }
  0x37   :  { %942 = vmatpush1.bf16.xpose.msra.mxu0 %v1337_v45  ;;  %982 = vmatpush1.bf16.xpose.msra.mxu1 %v1339_v46  ;;  %v1357_v45 = vcombine.low %v126_v29, %v134_v34  ;;  %v1359_v46 = vcombine.low %v127_v35, %v135_v36  ;;  %v145_v29 = vld [vmem:[#allocation5 + $0x328] sm:$0xff] }
  0x38   :  { %943 = vmatprep.subr.bf16.mxu0 %v1322_v47  ;;  %983 = vmatprep.subr.bf16.mxu1 %v1324_v48  ;;  %v1342_v47 = vcombine.high %v110_v41, %v118_v42  ;;  %v1344_v48 = vcombine.high %v111_v43, %v119_v44  ;;  %v153_v34 = vld [vmem:[#allocation5 + $0x368] sm:$0xff] }
  0x3f   :  { %944 = vmatpush1.bf16.xpose.msra.mxu0 %v1321_v53  ;;  %984 = vmatpush1.bf16.xpose.msra.mxu1 %v1323_v54  ;;  %v1341_v53 = vcombine.low %v110_v41, %v118_v42  ;;  %v1343_v54 = vcombine.low %v111_v43, %v119_v44  ;;  %v136_v42 = vld [vmem:[#allocation5 + $0x2e0] sm:$0xff]  ;;  %v129_v43 = vld [vmem:[#allocation5 + $0x2a8] sm:$0xff] }
  0x40   :  { %945 = vmatprep.subr.bf16.mxu0 %v1306_v55  ;;  %985 = vmatprep.subr.bf16.mxu1 %v1308_v56  ;;  %v1326_v55 = vcombine.high %v94_v49, %v102_v50  ;;  %v1328_v56 = vcombine.high %v95_v51, %v103_v52  ;;  %v137_v44 = vld [vmem:[#allocation5 + $0x2e8] sm:$0xff] }
  0x47   :  { %946 = vmatpush1.bf16.xpose.msra.mxu0 %v1305_v61  ;;  %986 = vmatpush1.bf16.xpose.msra.mxu1 %v1307_v62  ;;  %v1325_v61 = vcombine.low %v94_v49, %v102_v50  ;;  %v1327_v62 = vcombine.low %v95_v51, %v103_v52  ;;  %v112_v49 = vld [vmem:[#allocation5 + $0x220] sm:$0xff]  ;;  %v113_v51 = vld [vmem:[#allocation5 + $0x228] sm:$0xff] }
  0x48   :  { %947 = vmatprep.subr.bf16.mxu0 %v1290_v63  ;;  %987 = vmatprep.subr.bf16.mxu1 %v1292_v0  ;;  %v1310_v63 = vcombine.high %v78_v57, %v86_v58  ;;  %v1312_v0 = vcombine.high %v79_v59, %v87_v60  ;;  %v120_v50 = vld [vmem:[#allocation5 + $0x260] sm:$0xff]  ;;  %v121_v52 = vld [vmem:[#allocation5 + $0x268] sm:$0xff] }
  0x4f   :  { %948 = vmatpush1.bf16.xpose.msra.mxu0 %v1289_v5  ;;  %988 = vmatpush1.bf16.xpose.msra.mxu1 %v1291_v6  ;;  %v1309_v5 = vcombine.low %v78_v57, %v86_v58  ;;  %v1311_v6 = vcombine.low %v79_v59, %v87_v60  ;;  %v96_v57 = vld [vmem:[#allocation5 + $0x1a0] sm:$0xff]  ;;  %v97_v59 = vld [vmem:[#allocation5 + $0x1a8] sm:$0xff] }
  0x50   :  { %949 = vmatprep.subr.bf16.mxu0 %v1274_v7  ;;  %989 = vmatprep.subr.bf16.mxu1 %v1276_v8  ;;  %v1294_v7 = vcombine.high %v62_v1, %v70_v2  ;;  %v1296_v8 = vcombine.high %v63_v3, %v71_v4  ;;  %v104_v58 = vld [vmem:[#allocation5 + $0x1e0] sm:$0xff]  ;;  %v105_v60 = vld [vmem:[#allocation5 + $0x1e8] sm:$0xff] }
  0x51   :  { %v80_v1 = vld [vmem:[#allocation5 + $0x120] sm:$0xff] }
  0x52   :  { %v88_v2 = vld [vmem:[#allocation5 + $0x160] sm:$0xff] }
  0x57   :  { %950 = vmatpush1.bf16.xpose.msra.mxu0 %v1273_v15  ;;  %990 = vmatpush1.bf16.xpose.msra.mxu1 %v1275_v16  ;;  %v1295_v15 = vcombine.low %v63_v3, %v71_v4  ;;  %v1278_v16 = vcombine.high %v46_v9, %v54_v10  ;;  %v81_v3 = vld [vmem:[#allocation5 + $0x128] sm:$0xff]  ;;  %v64_v9 = vld [vmem:[#allocation5 + $0xa0] sm:$0xff] }
  0x58   :  { %1015 = vmatprep.subr.bf16.mxu0 %v1390_v17  ;;  %1055 = vmatprep.subr.bf16.mxu1 %v1392_v18  ;;  %v1280_v17 = vcombine.high %v47_v11, %v55_v12  ;;  %v1528_v18 = vld [vmem:[#allocation2 + $0x8] sm:$0xff]  ;;  %v89_v4 = vld [vmem:[#allocation5 + $0x168] sm:$0xff]  ;;  %v72_v10 = vld [vmem:[#allocation5 + $0xe0] sm:$0xff] }
  0x59   :  { %v1532_v24 = vrot.slane %v1528_v18, %v1507_v23 }
  0x5e   :  { %968 = vmatmul.mubr.bf16.vlgmr.msra.gmra.mxu0 %v204_v20  ;;  %1008 = vmatmul.mubr.bf16.vlgmr.msra.gmra.mxu1 %v226_v27  ;;  %v168_v20 = vld [vmem:[#allocation5 + $0x3e0] sm:$0xff] }
  0x5f   :  { %1016 = vmatpush1.bf16.xpose.msra.mxu0 %v1389_v28  ;;  %1056 = vmatpush1.bf16.xpose.msra.mxu1 %v1391_v30  ;;  %v1394_v27 = vcombine.high %v160_v19, %v168_v20  ;;  %v1396_v28 = vcombine.high %v161_v21, %v169_v22  ;;  %v245_v30 = vcombine.high %v1532_v24, %v1532_v24 }
  0x60   :  { %1017 = vmatprep.subr.bf16.mxu0 %v1374_v31  ;;  %1057 = vmatprep.subr.bf16.mxu1 %v1376_v32  ;;  %v211_v31 = vrot.slane %v1521_v14, %v1507_v23  ;;  %v144_v32 = vld [vmem:[#allocation5 + $0x320] sm:$0xff] }
  0x61   :  { %1047 = vmatprep.mubr.bf16.mxu0 %v225_v26  ;;  %1087 = vmatprep.mubr.bf16.mxu1 %v229_v33  ;;  %v1279_v26 = vcombine.low %v47_v11, %v55_v12  ;;  %v152_v33 = vld [vmem:[#allocation5 + $0x360] sm:$0xff]  ;;  %v267_v35 = vrot.slane %v245_v30, %v1507_v23  ;;  %v65_v11 = vld [vmem:[#allocation5 + $0xa8] sm:$0xff]  ;;  %v230_v30 = vcombine.high %v1528_v18, %v1528_v18 }
  0x62   :  { %v227_v36 = vcombine.high %v211_v31, %v211_v31  ;;  %v128_v14 = vld [vmem:[#allocation5 + $0x2a0] sm:$0xff]  ;;  %v73_v12 = vld [vmem:[#allocation5 + $0xe8] sm:$0xff]  ;;  %v253_v18 = vrot.slane %v1532_v24, %v1507_v23  ;;  %v130_v24 = vld [vmem:[#allocation5 + $0x2b0] sm:$0xff] }
  0x63   :  { %v277_v41 = vcombine.high %v267_v35, %v267_v35 }
  0x67   :  { %1018 = vmatpush1.bf16.xpose.msra.mxu0 %v1373_v37  ;;  %1058 = vmatpush1.bf16.xpose.msra.mxu1 %v1375_v38  ;;  %v1393_v37 = vcombine.low %v160_v19, %v168_v20  ;;  %v1395_v38 = vcombine.low %v161_v21, %v169_v22  ;;  %v48_v19 = vld [vmem:[#allocation5 + $0x20] sm:$0xff]  ;;  %v49_v21 = vld [vmem:[#allocation5 + $0x28] sm:$0xff] }
  0x68   :  { %1019 = vmatprep.subr.bf16.mxu0 %v1358_v39  ;;  %1059 = vmatprep.subr.bf16.mxu1 %v1360_v40  ;;  %v1378_v39 = vcombine.high %v144_v32, %v152_v33  ;;  %v1380_v40 = vcombine.high %v145_v29, %v153_v34  ;;  %v56_v20 = vld [vmem:[#allocation5 + $0x60] sm:$0xff]  ;;  %v57_v22 = vld [vmem:[#allocation5 + $0x68] sm:$0xff] }
  0x6f   :  { %1020 = vmatpush1.bf16.xpose.msra.mxu0 %v1357_v45  ;;  %1060 = vmatpush1.bf16.xpose.msra.mxu1 %v1359_v46  ;;  %v1377_v45 = vcombine.low %v144_v32, %v152_v33  ;;  %v1379_v46 = vcombine.low %v145_v29, %v153_v34  ;;  %v170_v32 = vld [vmem:[#allocation5 + $0x3f0] sm:$0xff]  ;;  %v163_v33 = vld [vmem:[#allocation5 + $0x3b8] sm:$0xff]  ;;  %v1542_v34 = vrot.slane %v230_v30, %v1507_v23 }
  0x70   :  { %1021 = vmatprep.subr.bf16.mxu0 %v1342_v47  ;;  %1061 = vmatprep.subr.bf16.mxu1 %v1344_v48  ;;  %v1362_v47 = vcombine.high %v128_v14, %v136_v42  ;;  %v1364_v48 = vcombine.high %v129_v43, %v137_v44  ;;  %v171_v29 = vld [vmem:[#allocation5 + $0x3f8] sm:$0xff]  ;;  %v50_v30 = vld [vmem:[#allocation5 + $0x30] sm:$0xff] }
  0x77   :  { %1022 = vmatpush1.bf16.xpose.msra.mxu0 %v1341_v53  ;;  %1062 = vmatpush1.bf16.xpose.msra.mxu1 %v1343_v54  ;;  %v1361_v53 = vcombine.low %v128_v14, %v136_v42  ;;  %v1363_v54 = vcombine.low %v129_v43, %v137_v44  ;;  %v147_v14 = vld [vmem:[#allocation5 + $0x338] sm:$0xff]  ;;  %v275_v44 = vcombine.high %v253_v18, %v253_v18 }
  0x78   :  { %1023 = vmatprep.subr.bf16.mxu0 %v1326_v55  ;;  %1063 = vmatprep.subr.bf16.mxu1 %v1328_v56  ;;  %v1346_v55 = vcombine.high %v112_v49, %v120_v50  ;;  %v1348_v56 = vcombine.high %v113_v51, %v121_v52  ;;  %v155_v42 = vld [vmem:[#allocation5 + $0x378] sm:$0xff] }
  0x7f   :  { %1024 = vmatpush1.bf16.xpose.msra.mxu0 %v1325_v61  ;;  %1064 = vmatpush1.bf16.xpose.msra.mxu1 %v1327_v62  ;;  %v1345_v61 = vcombine.low %v112_v49, %v120_v50  ;;  %v1347_v62 = vcombine.low %v113_v51, %v121_v52  ;;  %v138_v50 = vld [vmem:[#allocation5 + $0x2f0] sm:$0xff]  ;;  %v131_v51 = vld [vmem:[#allocation5 + $0x2b8] sm:$0xff] }
  0x80   :  { %1025 = vmatprep.subr.bf16.mxu0 %v1310_v63  ;;  %1065 = vmatprep.subr.bf16.mxu1 %v1312_v0  ;;  %v1330_v63 = vcombine.high %v96_v57, %v104_v58  ;;  %v1332_v0 = vcombine.high %v97_v59, %v105_v60  ;;  %v139_v52 = vld [vmem:[#allocation5 + $0x2f8] sm:$0xff] }
  0x87   :  { %1026 = vmatpush1.bf16.xpose.msra.mxu0 %v1309_v5  ;;  %1066 = vmatpush1.bf16.xpose.msra.mxu1 %v1311_v6  ;;  %v1329_v5 = vcombine.low %v96_v57, %v104_v58  ;;  %v1331_v6 = vcombine.low %v97_v59, %v105_v60  ;;  %v114_v57 = vld [vmem:[#allocation5 + $0x230] sm:$0xff]  ;;  %v115_v59 = vld [vmem:[#allocation5 + $0x238] sm:$0xff] }
  0x88   :  { %1027 = vmatprep.subr.bf16.mxu0 %v1294_v7  ;;  %1067 = vmatprep.subr.bf16.mxu1 %v1296_v8  ;;  %v1314_v7 = vcombine.high %v80_v1, %v88_v2  ;;  %v1316_v8 = vcombine.high %v81_v3, %v89_v4  ;;  %v122_v58 = vld [vmem:[#allocation5 + $0x270] sm:$0xff]  ;;  %v123_v60 = vld [vmem:[#allocation5 + $0x278] sm:$0xff] }
  0x8f   :  { %1028 = vmatpush1.bf16.xpose.msra.mxu0 %v1293_v13  ;;  %1068 = vmatpush1.bf16.xpose.msra.mxu1 %v1295_v15  ;;  %v1313_v13 = vcombine.low %v80_v1, %v88_v2  ;;  %v1315_v15 = vcombine.low %v81_v3, %v89_v4  ;;  %v98_v1 = vld [vmem:[#allocation5 + $0x1b0] sm:$0xff]  ;;  %v99_v3 = vld [vmem:[#allocation5 + $0x1b8] sm:$0xff] }
  0x90   :  { %1029 = vmatprep.subr.bf16.mxu0 %v1278_v16  ;;  %1069 = vmatprep.subr.bf16.mxu1 %v1280_v17  ;;  %v1298_v16 = vcombine.high %v64_v9, %v72_v10  ;;  %v1300_v17 = vcombine.high %v65_v11, %v73_v12  ;;  %v106_v2 = vld [vmem:[#allocation5 + $0x1f0] sm:$0xff]  ;;  %v107_v4 = vld [vmem:[#allocation5 + $0x1f8] sm:$0xff] }
  0x97   :  { %1030 = vmatpush1.bf16.xpose.msra.mxu0 %v1277_v25  ;;  %1070 = vmatpush1.bf16.xpose.msra.mxu1 %v1279_v26  ;;  %v1297_v25 = vcombine.low %v64_v9, %v72_v10  ;;  %v1299_v26 = vcombine.low %v65_v11, %v73_v12  ;;  %v82_v9 = vld [vmem:[#allocation5 + $0x130] sm:$0xff]  ;;  %v83_v11 = vld [vmem:[#allocation5 + $0x138] sm:$0xff] }
  0x98   :  { %1095 = vmatprep.subr.bf16.mxu0 %v1394_v27  ;;  %1135 = vmatprep.subr.bf16.mxu1 %v1396_v28  ;;  %v1282_v27 = vcombine.high %v48_v19, %v56_v20  ;;  %v1284_v28 = vcombine.high %v49_v21, %v57_v22  ;;  %v90_v10 = vld [vmem:[#allocation5 + $0x170] sm:$0xff]  ;;  %v91_v12 = vld [vmem:[#allocation5 + $0x178] sm:$0xff] }
  0x9e   :  { %1048 = vmatmul.mubr.bf16.vlgmr.msra.gmra.mxu0 %v211_v31  ;;  %1088 = vmatmul.mubr.bf16.vlgmr.msra.gmra.mxu1 %v227_v36  ;;  %v162_v31 = vld [vmem:[#allocation5 + $0x3b0] sm:$0xff]  ;;  %v1283_v36 = vcombine.low %v49_v21, %v57_v22  ;;  %v67_v21 = vld [vmem:[#allocation5 + $0xb8] sm:$0xff] }
  0x9f   :  { %1096 = vmatpush1.bf16.xpose.msra.mxu0 %v1393_v37  ;;  %1136 = vmatpush1.bf16.xpose.msra.mxu1 %v1395_v38  ;;  %v1398_v37 = vcombine.high %v162_v31, %v170_v32  ;;  %v1400_v38 = vcombine.high %v163_v33, %v171_v29  ;;  %v75_v22 = vld [vmem:[#allocation5 + $0xf8] sm:$0xff] }
  0xa0   :  { %1097 = vmatprep.subr.bf16.mxu0 %v1378_v39  ;;  %1137 = vmatprep.subr.bf16.mxu1 %v1380_v40  ;;  %v246_v39 = vcombine.high %v1542_v34, %v1542_v34  ;;  %v146_v40 = vld [vmem:[#allocation5 + $0x330] sm:$0xff] }
  0xa1   :  { %1127 = vmatprep.mubr.bf16.mxu0 %v267_v35  ;;  %1167 = vmatprep.mubr.bf16.mxu1 %v277_v41  ;;  %v1281_v35 = vcombine.low %v48_v19, %v56_v20  ;;  %v154_v41 = vld [vmem:[#allocation5 + $0x370] sm:$0xff] }
  0xa2   :  { %v274_v43 = vrot.slane %v246_v39, %v1507_v23  ;;  %v66_v19 = vld [vmem:[#allocation5 + $0xb0] sm:$0xff] }
  0xa3   :  { %v74_v20 = vld [vmem:[#allocation5 + $0xf0] sm:$0xff] }
  0xa4   :  { %v278_v49 = vcombine.high %v274_v43, %v274_v43 }
  0xa7   :  { %1098 = vmatpush1.bf16.xpose.msra.mxu0 %v1377_v45  ;;  %1138 = vmatpush1.bf16.xpose.msra.mxu1 %v1379_v46  ;;  %v1397_v45 = vcombine.low %v162_v31, %v170_v32  ;;  %v1399_v46 = vcombine.low %v163_v33, %v171_v29  ;;  %v58_v31 = vld [vmem:[#allocation5 + $0x70] sm:$0xff]  ;;  %v51_v32 = vld [vmem:[#allocation5 + $0x38] sm:$0xff]  ;;  %v1301_v29 = vcombine.low %v66_v19, %v74_v20 }
  0xa8   :  { %1099 = vmatprep.subr.bf16.mxu0 %v1362_v47  ;;  %1139 = vmatprep.subr.bf16.mxu1 %v1364_v48  ;;  %v1382_v47 = vcombine.high %v146_v40, %v154_v41  ;;  %v1384_v48 = vcombine.high %v147_v14, %v155_v42  ;;  %v59_v33 = vld [vmem:[#allocation5 + $0x78] sm:$0xff] }
  0xa9   :  { %v1287_v39 = vcombine.low %v51_v32, %v59_v33 }
  0xaf   :  { %1100 = vmatpush1.bf16.xpose.msra.mxu0 %v1361_v53  ;;  %1140 = vmatpush1.bf16.xpose.msra.mxu1 %v1363_v54  ;;  %v1381_v53 = vcombine.low %v146_v40, %v154_v41  ;;  %v1383_v54 = vcombine.low %v147_v14, %v155_v42  ;;  %v1272_v41 = vld [vmem:[%s1559_s2] ss:$0 sm:$0xff]  ;;  %s1480_s2 = smov [#allocation7]  }
  0xb0   :  { %1101 = vmatprep.subr.bf16.mxu0 %v1346_v55  ;;  %1141 = vmatprep.subr.bf16.mxu1 %v1348_v56  ;;  %v1366_v55 = vcombine.high %v130_v24, %v138_v50  ;;  %v1368_v56 = vcombine.high %v131_v51, %v139_v52  ;;  %s1262_s24 = sshll.u32 %s1480_s2, 4  ;;  %s1263_s24 = int_to_ptr.vmem [resolvable:$true] %s1262_s24 }
  0xb1   :  { %s1449_s25 = scalar_lea.vmem %s1263_s24, 32  ;;  %p1454_p11 = scmp.lt.s32.totalorder %s1263_s24, %s1263_s24 }
  0xb2   :  { %p1450_p10 = scmp.ne.s32.totalorder %s1263_s24, %s1449_s25  ;;  %p1455_p12 = scmp.lt.s32.totalorder %s1449_s25, %s1449_s25 }
  0xb4   :  { %p1456_p13 = por %p1455_p12, %p1454_p11 }
  0xb6   :  { %p1457_p0 = pnand %p1456_p13, %p1450_p10 }
  0xb7   :  { %1102 = vmatpush1.bf16.xpose.msra.mxu0 %v1345_v61  ;;  %1142 = vmatpush1.bf16.xpose.msra.mxu1 %v1347_v62  ;;  %v1365_v61 = vcombine.low %v130_v24, %v138_v50  ;;  %v1367_v62 = vcombine.low %v131_v51, %v139_v52 }
  0xb8   :  { %1103 = vmatprep.subr.bf16.mxu0 %v1330_v63  ;;  %1143 = vmatprep.subr.bf16.mxu1 %v1332_v0  ;;  %v1350_v63 = vcombine.high %v114_v57, %v122_v58  ;;  %v1352_v0 = vcombine.high %v115_v59, %v123_v60 }
  0xbf   :  { %1104 = vmatpush1.bf16.xpose.msra.mxu0 %v1329_v5  ;;  %1144 = vmatpush1.bf16.xpose.msra.mxu1 %v1331_v6  ;;  %v1349_v5 = vcombine.low %v114_v57, %v122_v58  ;;  %v1351_v6 = vcombine.low %v115_v59, %v123_v60 }
  0xc0   :  { %1105 = vmatprep.subr.bf16.mxu0 %v1314_v7  ;;  %1145 = vmatprep.subr.bf16.mxu1 %v1316_v8  ;;  %v1334_v7 = vcombine.high %v98_v1, %v106_v2  ;;  %v1336_v8 = vcombine.high %v99_v3, %v107_v4 }
  0xc7   :  { %1106 = vmatpush1.bf16.xpose.msra.mxu0 %v1313_v13  ;;  %1146 = vmatpush1.bf16.xpose.msra.mxu1 %v1315_v15  ;;  %v1333_v13 = vcombine.low %v98_v1, %v106_v2  ;;  %v1335_v15 = vcombine.low %v99_v3, %v107_v4 }
  0xc8   :  { %1107 = vmatprep.subr.bf16.mxu0 %v1298_v16  ;;  %1147 = vmatprep.subr.bf16.mxu1 %v1300_v17  ;;  %v1318_v16 = vcombine.high %v82_v9, %v90_v10  ;;  %v1320_v17 = vcombine.high %v83_v11, %v91_v12 }
  0xcf   :  { %1108 = vmatpush1.bf16.xpose.msra.mxu0 %v1297_v25  ;;  %1148 = vmatpush1.bf16.xpose.msra.mxu1 %v1299_v26  ;;  %v1317_v25 = vcombine.low %v82_v9, %v90_v10  ;;  %v1319_v26 = vcombine.low %v83_v11, %v91_v12 }
  0xd0   :  { %1109 = vmatprep.subr.bf16.mxu0 %v1282_v27  ;;  %1149 = vmatprep.subr.bf16.mxu1 %v1284_v28  ;;  %v1302_v27 = vcombine.high %v66_v19, %v74_v20  ;;  %v1304_v28 = vcombine.high %v67_v21, %v75_v22 }
  0xd7   :  { %1110 = vmatpush1.bf16.xpose.msra.mxu0 %v1281_v35  ;;  %1150 = vmatpush1.bf16.xpose.msra.mxu1 %v1283_v36  ;;  %v1303_v35 = vcombine.low %v67_v21, %v75_v22  ;;  %v1286_v36 = vcombine.high %v50_v30, %v58_v31 }
  0xd8   :  { %1175 = vmatprep.subr.bf16.mxu0 %v1398_v37  ;;  %1215 = vmatprep.subr.bf16.mxu1 %v1400_v38  ;;  %v1288_v37 = vcombine.high %v51_v32, %v59_v33  ;;  %v1285_v38 = vcombine.low %v50_v30, %v58_v31 }
  0xde   :  { %1128 = vmatmul.mubr.bf16.vlgmr.msra.gmra.mxu0 %v253_v18  ;;  %1168 = vmatmul.mubr.bf16.vlgmr.msra.gmra.mxu1 %v275_v44  ;;  %v260_v18 = vrot.slane %v1542_v34, %v1507_v23 }
  0xdf   :  { %1176 = vmatpush1.bf16.xpose.msra.mxu0 %v1397_v45  ;;  %1216 = vmatpush1.bf16.xpose.msra.mxu1 %v1399_v46 }
  0xe0   :  { %1177 = vmatprep.subr.bf16.mxu0 %v1382_v47  ;;  %1217 = vmatprep.subr.bf16.mxu1 %v1384_v48  ;;  %v276_v40 = vcombine.high %v260_v18, %v260_v18 }
  0xe1   :  { %1207 = vmatprep.mubr.bf16.mxu0 %v274_v43  ;;  %1247 = vmatprep.mubr.bf16.mxu1 %v278_v49 }
  0xe7   :  { %1178 = vmatpush1.bf16.xpose.msra.mxu0 %v1381_v53  ;;  %1218 = vmatpush1.bf16.xpose.msra.mxu1 %v1383_v54 }
  0xe8   :  { %1179 = vmatprep.subr.bf16.mxu0 %v1366_v55  ;;  %1219 = vmatprep.subr.bf16.mxu1 %v1368_v56 }
  0xef   :  { %1180 = vmatpush1.bf16.xpose.msra.mxu0 %v1365_v61  ;;  %1220 = vmatpush1.bf16.xpose.msra.mxu1 %v1367_v62 }
  0xf0   :  { %1181 = vmatprep.subr.bf16.mxu0 %v1350_v63  ;;  %1221 = vmatprep.subr.bf16.mxu1 %v1352_v0 }
  0xf7   :  { %1182 = vmatpush1.bf16.xpose.msra.mxu0 %v1349_v5  ;;  %1222 = vmatpush1.bf16.xpose.msra.mxu1 %v1351_v6 }
  0xf8   :  { %1183 = vmatprep.subr.bf16.mxu0 %v1334_v7  ;;  %1223 = vmatprep.subr.bf16.mxu1 %v1336_v8 }
  0xff   :  { %1184 = vmatpush1.bf16.xpose.msra.mxu0 %v1333_v13  ;;  %1224 = vmatpush1.bf16.xpose.msra.mxu1 %v1335_v15 }
 0x100   :  { %1185 = vmatprep.subr.bf16.mxu0 %v1318_v16  ;;  %1225 = vmatprep.subr.bf16.mxu1 %v1320_v17 }
 0x107   :  { %1186 = vmatpush1.bf16.xpose.msra.mxu0 %v1317_v25  ;;  %1226 = vmatpush1.bf16.xpose.msra.mxu1 %v1319_v26 }
 0x108   :  { %1187 = vmatprep.subr.bf16.mxu0 %v1302_v27  ;;  %1227 = vmatprep.subr.bf16.mxu1 %v1304_v28 }
 0x10f   :  { %1188 = vmatpush1.bf16.xpose.msra.mxu0 %v1301_v29  ;;  %1228 = vmatpush1.bf16.xpose.msra.mxu1 %v1303_v35 }
 0x110   :  { %1189 = vmatprep.subr.bf16.mxu0 %v1286_v36  ;;  %1229 = vmatprep.subr.bf16.mxu1 %v1288_v37 }
 0x117   :  { %1190 = vmatpush1.bf16.xpose.msra.mxu0 %v1285_v38  ;;  %1230 = vmatpush1.bf16.xpose.msra.mxu1 %v1287_v39 }
 0x11e   :  { %v969_v14 = vpop.f32.mrf.mxu0  ;;  %1208 = vmatmul.mubr.bf16.vlgmr.msra.gmra.mxu0 %v260_v18  ;;  %v1009_v43 = vpop.f32.mrf.mxu1  ;;  %1248 = vmatmul.mubr.bf16.vlgmr.msra.gmra.mxu1 %v276_v40 }
 0x11f   :  { %v970_v42 = vadd.f32 %v1272_v41, %v969_v14 }
 0x120   :  { %v971_v44 = vpop.f32.mrf.mxu0  ;;  %v1011_v46 = vpop.f32.mrf.mxu1 }
 0x121   :  { %v1010_v45 = vadd.f32 %v1009_v43, %v970_v42 }
 0x122   :  { %v972_v47 = vpop.f32.mrf.mxu0  ;;  %v1012_v48 = vpop.f32.mrf.mxu1 }
 0x124   :  { %v973_v49 = vpop.f32.mrf.mxu0  ;;  %v1013_v24 = vpop.f32.mrf.mxu1 }
 0x15e   :  { %v1049_v50 = vpop.f32.mrf.mxu0  ;;  %v1089_v34 = vpop.f32.mrf.mxu1 }
 0x15f   :  { %v1050_v23 = vadd.f32 %v1049_v50, %v1010_v45 }
 0x160   :  { %v1051_v51 = vpop.f32.mrf.mxu0  ;;  %v1091_v53 = vpop.f32.mrf.mxu1 }
 0x161   :  { %v1090_v52 = vadd.f32 %v1089_v34, %v1050_v23 }
 0x162   :  { %v1052_v54 = vpop.f32.mrf.mxu0  ;;  %v1092_v55 = vpop.f32.mrf.mxu1 }
 0x164   :  { %v1053_v56 = vpop.f32.mrf.mxu0  ;;  %v1093_v57 = vpop.f32.mrf.mxu1 }
 0x19e   :  { %v1129_v58 = vpop.f32.mrf.mxu0  ;;  %v1169_v59 = vpop.f32.mrf.mxu1 }
 0x19f   :  { %v1130_v2 = vadd.f32 %v1129_v58, %v1090_v52 }
 0x1a0   :  { %v1131_v60 = vpop.f32.mrf.mxu0  ;;  %v1171_v61 = vpop.f32.mrf.mxu1 }
 0x1a1   :  { %v1170_v3 = vadd.f32 %v1169_v59, %v1130_v2 }
 0x1a2   :  { %v1132_v62 = vpop.f32.mrf.mxu0  ;;  %v1172_v63 = vpop.f32.mrf.mxu1 }
 0x1a4   :  { %v1133_v0 = vpop.f32.mrf.mxu0  ;;  %v1173_v1 = vpop.f32.mrf.mxu1 }
 0x1de   :  { %v1209_v4 = vpop.f32.mrf.mxu0  ;;  %v1249_v6 = vpop.f32.mrf.mxu1 }
 0x1df   :  { %v1210_v5 = vadd.f32 %v1209_v4, %v1170_v3 }
 0x1e0   :  { %v1211_v7 = vpop.f32.mrf.mxu0  ;;  %v1251_v9 = vpop.f32.mrf.mxu1 }
 0x1e1   :  { %v1250_v8 = vadd.f32 %v1249_v6, %v1210_v5 }
 0x1e2   :  { %v1212_v10 = vpop.f32.mrf.mxu0  ;;  %v1252_v11 = vpop.f32.mrf.mxu1 }
 0x1e3   :  { %1255 = vst [vmem:[#allocation7] sm:$0x3] %v1250_v8 }
 0x1e4   :  { %v1213_v12 = vpop.f32.mrf.mxu0 }
 0x1e5   :  { %1460 = shalt.err (!%p1457_p0)
}
 0x1e6   :  { %1265 = dma.vmem_to_hbm [thread:$0]  %s1263_s24, 32, %s1560_s3, [#allocation4]   ;;  %v1253_v13 = vpop.f32.mrf.mxu1 }
 0x1e7   :  { %1473 = dma.done.wait [#allocation4], 32  }
 0x1e8   :  { %1474 = vsyncadd [#allocation4], 4294967264 }
 0x1e9   :  { %1269 = vsyncpa [#allocation3], 1 }
 0x1ea   :  { %1270 = vsyncpa [#allocation6], 1 }
 0x1eb   :  { %1271 = vsyncpa [#allocation4], 1 }

</bundles_post_ra>
